<compile_context>
chip_gen: v7x
topology: tpu7x:2x2x1
jax: 0.10.0
libtpu: 0.0.40
codegen_flags: <defaults>
</compile_context>

<pallas_src>
import numpy as np
import jax
import jax.numpy as jnp
from jax.experimental import pallas as pl
from jax.experimental.pallas import tpu as pltpu

N_EMBD = 64
BLOCK_SIZE = 32      # max sequence length (size of the torch tril buffer)
PACK_LANES = 128     # target lane width of the packed attention matmuls
NEG_INF = -1e9


def head_kernel(x_ref, wqkv_ref, bias_ref, o_ref):
    """One grid step: NG groups, each packing G batch elements (P = G*T rows).

    x_ref    : (NG, P, C)
    wqkv_ref : (C, 3H)   fused [Wq*scale | Wk | Wv], pre-transposed
    bias_ref : (P, P)    additive mask: 0 on same-batch causal entries, -1e9 else
    o_ref    : (NG, P, H)
    """
    ng, p, c = x_ref.shape
    h = o_ref.shape[-1]
    in_dt = x_ref.dtype
    f32_path = in_dt == jnp.float32

    # ---- fused QKV projection: ONE (NG*P, C) x (C, 3H) MXU matmul ----
    x2d = x_ref[...].reshape(ng * p, c)
    qkv = jnp.dot(x2d, wqkv_ref[...], preferred_element_type=jnp.float32)
    qkv = qkv.reshape(ng, p, 3 * h)

    # C**-0.5 scale already folded into the query weights (wrapper).
    q = qkv[:, :, :h].astype(in_dt)          # bf16 on the bf16 path, f32 otherwise
    k = qkv[:, :, h:2 * h].astype(in_dt)
    v = qkv[:, :, 2 * h:].astype(in_dt)

    # ---- block-diagonal packed attention: one (P,H)x(H,P) matmul per group ----
    wei = jnp.einsum('gth,gsh->gts', q, k, preferred_element_type=jnp.float32)
    wei = wei + bias_ref[...]                # causal + cross-batch mask (additive)

    # softmax over the packed key axis (f32)
    wei = wei - jnp.max(wei, axis=-1, keepdims=True)
    wei = jnp.exp(wei)
    denom = jnp.sum(wei, axis=-1, keepdims=True)
    wei = wei * pl.reciprocal(denom, approx=not f32_path)

    # dropout(0.2) on wei: eval-mode forward == identity
    # TODO(synk): train-mode dropout needs pltpu.prng_seed/prng_random_bits.

    out = jnp.einsum('gts,gsh->gth', wei.astype(in_dt), v,
                     preferred_element_type=jnp.float32)
    # TODO(synk): lane-dense (T*H)-wide store skipped (unsupported lane-merge
    # relayout); see header note.
    o_ref[...] = out.astype(o_ref.dtype)


def _tpu_generation():
    """Best-effort TPU generation from device_kind; 0 if unknown."""
    try:
        kind = jax.devices()[0].device_kind.lower()
    except Exception:
        return 0
    if 'tpu' not in kind:
        return 0
    for g in (7, 6, 5, 4, 3, 2):
        if str(g) in kind:
            return g
    return 0


def _tiling(B, T, dtype, gen):
    """Choose (G batches per packed group, NG groups per grid step, vmem limit)."""
    G = max(1, min(PACK_LANES // max(T, 1), B))    # pack toward 128-lane wei tiles
    itemsize = jnp.dtype(dtype).itemsize
    if gen >= 7:            # v7x: 64 MiB VMEM/TC, 2 TCs -> smaller tile, deeper grid
        cap, vmem, min_steps = (128 if itemsize == 4 else 256), 40 * 1024 * 1024, 8
    elif gen >= 4:          # v4/v5e/v6e: 128 MiB VMEM -> bigger tiles
        cap, vmem, min_steps = 256, 96 * 1024 * 1024, 2
    else:                   # unknown backend: conservative defaults
        cap, vmem, min_steps = (128 if itemsize == 4 else 256), None, 2
    groups_total = pl.cdiv(B, G)
    ng = max(1, min(cap // G, groups_total))
    # keep the grid deep enough for pipelining / both v7x TensorCores
    while ng > 1 and pl.cdiv(groups_total, ng) < min_steps:
        ng = max(1, ng // 2)
    return G, ng, vmem


def head_forward(x, w_key, w_query, w_value):
    """Forward pass of `Head` (eval mode).  x: (B, T, C); w_*: (head_size, n_embd)."""
    B, T, C = x.shape
    H = w_key.shape[0]
    assert C == N_EMBD and T <= BLOCK_SIZE

    dt = x.dtype
    # Fuse [q | k | v] into one pre-transposed (C, 3H) matrix; fold C**-0.5 into
    # the query columns (exact: 64**-0.5 = 0.125 is a power of two).
    scale = jnp.float32(C) ** -0.5
    wqkv = jnp.concatenate(
        [w_query.T.astype(jnp.float32) * scale,
         w_key.T.astype(jnp.float32),
         w_value.T.astype(jnp.float32)], axis=1).astype(dt)

    gen = _tpu_generation()
    G, ng, vmem_limit = _tiling(B, T, dt, gen)
    P = G * T
    bt_tile = ng * G
    grid_steps = pl.cdiv(pl.cdiv(B, G), ng)
    B_pad = grid_steps * bt_tile
    if B_pad != B:                            # robust to awkward B: pad + slice
        x = jnp.pad(x, ((0, B_pad - B), (0, 0), (0, 0)))
    xg = x.reshape(B_pad // G, P, C)          # free row-major reshape (metadata only)

    # Additive mask over the packed (P, P) tile: keep same-batch causal entries.
    r = np.arange(P)
    keep = (r[:, None] // T == r[None, :] // T) & ((r[None, :] % T) <= (r[:, None] % T))
    bias = jnp.asarray(np.where(keep, 0.0, NEG_INF), dtype=jnp.float32)

    out = pl.pallas_call(
        head_kernel,
        out_shape=jax.ShapeDtypeStruct((B_pad // G, P, H), dt),
        grid_spec=pltpu.PrefetchScalarGridSpec(
            num_scalar_prefetch=0,
            grid=(grid_steps,),
            in_specs=[
                pl.BlockSpec((ng, P, C), lambda i: (i, 0, 0)),
                pl.BlockSpec((C, 3 * H), lambda i: (0, 0)),   # weights stay resident
                pl.BlockSpec((P, P), lambda i: (0, 0)),       # mask stays resident
            ],
            out_specs=pl.BlockSpec((ng, P, H), lambda i: (i, 0, 0)),
        ),
        compiler_params=pltpu.CompilerParams(
            dimension_semantics=("parallel",),
            vmem_limit_bytes=vmem_limit,
        ),
    )(xg, wqkv, bias)

    return out.reshape(B_pad, T, H)[:B]


def reference_forward(x, w_key, w_query, w_value):
    """Pure-JAX reference mirroring the PyTorch forward (eval mode)."""
    B, T, C = x.shape
    k = x @ w_key.T
    q = x @ w_query.T
    v = x @ w_value.T
    wei = (q @ jnp.swapaxes(k, -2, -1)) * (C ** -0.5)
    tril = jnp.tril(jnp.ones((T, T), dtype=bool))
    wei = jnp.where(tril, wei, NEG_INF)
    wei = jax.nn.softmax(wei, axis=-1)
    return wei @ v


if __name__ == "__main__":
    key = jax.random.PRNGKey(0)
    head_size = 16
    bound = 1.0 / (N_EMBD ** 0.5)   # nn.Linear default init bound

    x = w_key_p = w_query_p = w_value_p = None
    # (6, 32) exercises the batch-padding path (B not a multiple of the pack size).
    for (B, T) in [(2, 8), (8, 32), (6, 32)]:
        kx, kk, kq, kv = jax.random.split(jax.random.fold_in(key, 100 * B + T), 4)
        x = jax.random.normal(kx, (B, T, N_EMBD), dtype=jnp.float32)
        w_key_p = jax.random.uniform(kk, (head_size, N_EMBD), jnp.float32, -bound, bound)
        w_query_p = jax.random.uniform(kq, (head_size, N_EMBD), jnp.float32, -bound, bound)
        w_value_p = jax.random.uniform(kv, (head_size, N_EMBD), jnp.float32, -bound, bound)

        out = jax.block_until_ready(head_forward(x, w_key_p, w_query_p, w_value_p))
        ref = reference_forward(x, w_key_p, w_query_p, w_value_p)
        assert out.shape == (B, T, head_size)
        assert jnp.allclose(out, ref, atol=1e-4, rtol=1e-4), f"f32 mismatch B={B} T={T}"

    # bf16-input path (bf16 q/k, bf16 P.V with f32 accumulation); compare against
    # an f32 reference evaluated on the same bf16-rounded values.
    x_bf = x.astype(jnp.bfloat16)
    wk_bf = w_key_p.astype(jnp.bfloat16)
    wq_bf = w_query_p.astype(jnp.bfloat16)
    wv_bf = w_value_p.astype(jnp.bfloat16)
    out_bf = jax.block_until_ready(head_forward(x_bf, wk_bf, wq_bf, wv_bf))
    ref_bf = reference_forward(x_bf.astype(jnp.float32), wk_bf.astype(jnp.float32),
                               wq_bf.astype(jnp.float32), wv_bf.astype(jnp.float32))
    assert out_bf.shape == ref_bf.shape
    assert jnp.allclose(out_bf.astype(jnp.float32), ref_bf, atol=5e-2, rtol=5e-2), "bf16 mismatch"

    print("KERNEL_OK")
</pallas_src>

<mosaic_0001>
module attributes {stable_mosaic.version = 11 : i64} {
  func.func @head_kernel(%arg0: i32, %arg1: memref<1x16x64xf32, #tpu.memory_space<vmem>>, %arg2: memref<64x48xf32, #tpu.memory_space<vmem>>, %arg3: memref<16x16xf32, #tpu.memory_space<vmem>>, %arg4: memref<1x16x16xf32, #tpu.memory_space<vmem>>) attributes {dimension_semantics = [#tpu.dimension_semantics<parallel>], iteration_bounds = array<i64: 1>, scalar_prefetch = 0 : i64, scratch_operands = 0 : i64, tpu.core_type = #tpu.core_type<tc>, window_params = [{transform_indices = @transform_0, window_bounds = array<i64: 1, 16, 64>}, {pipeline_mode = #tpu.pipeline_mode<synchronous>, transform_indices = @transform_1, window_bounds = array<i64: 64, 48>}, {pipeline_mode = #tpu.pipeline_mode<synchronous>, transform_indices = @transform_2, window_bounds = array<i64: 16, 16>}, {transform_indices = @transform_3, window_bounds = array<i64: 1, 16, 16>}]} {
    %c0 = arith.constant 0 : index
    %c0_0 = arith.constant 0 : index
    %c0_1 = arith.constant 0 : index
    %0 = vector.load %arg1[%c0, %c0_0, %c0_1] : memref<1x16x64xf32, #tpu.memory_space<vmem>>, vector<1x16x64xf32>
    %1 = vector.shape_cast %0 : vector<1x16x64xf32> to vector<16x64xf32>
    %c0_2 = arith.constant 0 : index
    %c0_3 = arith.constant 0 : index
    %2 = vector.load %arg2[%c0_2, %c0_3] : memref<64x48xf32, #tpu.memory_space<vmem>>, vector<64x48xf32>
    %cst = arith.constant dense<0.000000e+00> : vector<16x48xf32>
    %3 = tpu.matmul %1, %2, %cst {dimension_numbers = #tpu.dot_dimension_numbers<[1], [0], [0], [1], [0, 0, 1, 1], [], []>} : vector<16x64xf32>, vector<64x48xf32>, vector<16x48xf32> -> vector<16x48xf32>
    %4 = vector.shape_cast %3 : vector<16x48xf32> to vector<1x16x48xf32>
    %5 = vector.extract_strided_slice %4 {offsets = [0, 0, 0], sizes = [1, 16, 16], strides = [1, 1, 1]} : vector<1x16x48xf32> to vector<1x16x16xf32>
    %6 = vector.extract_strided_slice %4 {offsets = [0, 0, 16], sizes = [1, 16, 16], strides = [1, 1, 1]} : vector<1x16x48xf32> to vector<1x16x16xf32>
    %7 = vector.extract_strided_slice %4 {offsets = [0, 0, 32], sizes = [1, 16, 16], strides = [1, 1, 1]} : vector<1x16x48xf32> to vector<1x16x16xf32>
    "tpu.trace_start"() <{level = 10 : i32, message = "gth,gsh->gts"}> : () -> ()
    %cst_4 = arith.constant dense<0.000000e+00> : vector<1x16x16xf32>
    %8 = tpu.matmul %5, %6, %cst_4 {dimension_numbers = #tpu.dot_dimension_numbers<[2], [2], [1], [1], [0, 0, 0, 1, 1, 1], [0], [0]>} : vector<1x16x16xf32>, vector<1x16x16xf32>, vector<1x16x16xf32> -> vector<1x16x16xf32>
    "tpu.trace_stop"() : () -> ()
    %c0_5 = arith.constant 0 : index
    %c0_6 = arith.constant 0 : index
    %9 = vector.load %arg3[%c0_5, %c0_6] : memref<16x16xf32, #tpu.memory_space<vmem>>, vector<16x16xf32>
    %10 = vector.shape_cast %9 : vector<16x16xf32> to vector<1x16x16xf32>
    %11 = arith.addf %8, %10 : vector<1x16x16xf32>
    %cst_7 = arith.constant dense<0xFF800000> : vector<1x16xf32>
    %12 = vector.multi_reduction <maximumf>, %11, %cst_7 [2] : vector<1x16x16xf32> to vector<1x16xf32>
    %13 = vector.shape_cast %12 : vector<1x16xf32> to vector<1x16x1xf32>
    %14 = vector.broadcast %13 : vector<1x16x1xf32> to vector<1x16x16xf32>
    %15 = arith.subf %11, %14 : vector<1x16x16xf32>
    %16 = math.exp %15 : vector<1x16x16xf32>
    %cst_8 = arith.constant dense<0.000000e+00> : vector<1x16xf32>
    %17 = vector.multi_reduction <add>, %16, %cst_8 [2] : vector<1x16x16xf32> to vector<1x16xf32>
    %18 = vector.shape_cast %17 : vector<1x16xf32> to vector<1x16x1xf32>
    %19 = tpu.reciprocal %18 : vector<1x16x1xf32> -> vector<1x16x1xf32>
    %20 = vector.broadcast %19 : vector<1x16x1xf32> to vector<1x16x16xf32>
    %21 = arith.mulf %16, %20 : vector<1x16x16xf32>
    "tpu.trace_start"() <{level = 10 : i32, message = "gts,gsh->gth"}> : () -> ()
    %cst_9 = arith.constant dense<0.000000e+00> : vector<1x16x16xf32>
    %22 = tpu.matmul %21, %7, %cst_9 {dimension_numbers = #tpu.dot_dimension_numbers<[2], [1], [1], [2], [0, 0, 0, 1, 1, 2], [0], [0]>} : vector<1x16x16xf32>, vector<1x16x16xf32>, vector<1x16x16xf32> -> vector<1x16x16xf32>
    "tpu.trace_stop"() : () -> ()
    %c0_10 = arith.constant 0 : index
    %c0_11 = arith.constant 0 : index
    %c0_12 = arith.constant 0 : index
    %23 = vector.load %arg4[%c0_10, %c0_11, %c0_12] : memref<1x16x16xf32, #tpu.memory_space<vmem>>, vector<1x16x16xf32>
    tpu.vector_store %arg4[%c0_10, %c0_11, %c0_12], %22 {strides = array<i32>} : memref<1x16x16xf32, #tpu.memory_space<vmem>>, vector<1x16x16xf32>,
    return
  }
  func.func @transform_0(%arg0: i32) -> (i32, i32, i32) {
    %c0_i32 = arith.constant 0 : i32
    %c0_i32_0 = arith.constant 0 : i32
    %c0_i32_1 = arith.constant 0 : i32
    return %arg0, %c0_i32, %c0_i32_0 : i32, i32, i32
  }
  func.func @transform_1(%arg0: i32) -> (i32, i32) {
    %c0_i32 = arith.constant 0 : i32
    %c0_i32_0 = arith.constant 0 : i32
    %c0_i32_1 = arith.constant 0 : i32
    return %c0_i32, %c0_i32_0 : i32, i32
  }
  func.func @transform_2(%arg0: i32) -> (i32, i32) {
    %c0_i32 = arith.constant 0 : i32
    %c0_i32_0 = arith.constant 0 : i32
    %c0_i32_1 = arith.constant 0 : i32
    return %c0_i32, %c0_i32_0 : i32, i32
  }
  func.func @transform_3(%arg0: i32) -> (i32, i32, i32) {
    %c0_i32 = arith.constant 0 : i32
    %c0_i32_0 = arith.constant 0 : i32
    %c0_i32_1 = arith.constant 0 : i32
    return %arg0, %c0_i32, %c0_i32_0 : i32, i32, i32
  }
}

</mosaic_0001>

<bundles_post_ra>
// kernel: tpu_custom_call.1
= control target key start
LH: loop header
LB: loop body
LE: loop exit
PB: predicated region body
PF: predicated region fallthrough
CT: control target
= control target key end

     0   :  { %vm25_vm0 = vcmask 523264   ;;  %s545_s0 = inlined_call_operand.vmem [shape: f32[1,16,64], index: 0, kind: input, shape index: {}]   ;;  %s546_s1 = inlined_call_operand.vmem [shape: f32[64,48], index: 1, kind: input, shape index: {}]   ;;  %s547_s2 = inlined_call_operand.vmem [shape: f32[16,16], index: 2, kind: input, shape index: {}]   ;;  %s548_s3 = inlined_call_operand.hbm [shape: f32[1,16,16], index: 3, kind: output, shape index: {}]  }
   0x1   :  { %v17_v0 = vld [vmem:[%s546_s1] sm:$0xff]  ;;  %v18_v1 = vld [vmem:[%s546_s1 + $0x8] sm:$0xff]  ;;  %v19_v2 = vld [vmem:[%s546_s1 + $0x10] sm:$0xff] }
   0x2   :  { %v385_v3 = vpack.c.bf16 %v18_v1, %v17_v0  ;;  %v20_v4 = vld [vmem:[%s546_s1 + $0x18] sm:$0xff]  ;;  %v21_v6 = vld [vmem:[%s546_s1 + $0x20] sm:$0xff]  ;;  %v22_v7 = vld [vmem:[%s546_s1 + $0x28] sm:$0xff] }
   0x3   :  { %v389_v5 = vpack.c.bf16 %v20_v4, %v19_v2  ;;  %v15_v8 = vld [vmem:[%s545_s0] sm:$0xff] }
   0x4   :  { %386 = vmatprep.subr.bf16.mxu0 %v385_v3  ;;  %368 = vmatprep.mubr.msk.f32.mxu0 %vm25_vm0, %v15_v8 }
   0x5   :  { %8 = vsyncpa [#allocation3], 0  ;;  %388 = vmatpush3.bf16.msra.mxu0 %v385_v3  ;;  %v393_v9 = vpack.c.bf16 %v22_v7, %v21_v6  ;;  %v23_v10 = vld [vmem:[%s546_s1 + $0x30] sm:$0xff]  ;;  %v24_v11 = vld [vmem:[%s546_s1 + $0x38] sm:$0xff]  ;;  %vm115_vm1 = vcmask 130048   ;;  %s458_s5 = smov 112  }
   0x6   :  { %390 = vmatprep.subr.bf16.mxu0 %v389_v5  ;;  %v397_v12 = vpack.c.bf16 %v24_v11, %v23_v10  ;;  %v16_v13 = vld [vmem:[%s545_s0 + $0x8] sm:$0xff]  ;;  %vm402_vm2 = vmpackc.low %vm115_vm1, %vm115_vm1  ;;  %v107_v22 = vld [vmem:[%s547_s2] sm:$0xff]  ;;  %s460_s8 = smov [#allocation2]  }
   0x7   :  { %v108_v21 = vld [vmem:[%s547_s2 + $0x8] sm:$0xff]  ;;  %s459_s2 = smov 96   ;;  %s315_s9 = sshll.u32 %s460_s8, 4  ;;  %s316_s9 = int_to_ptr.vmem [resolvable:$true] %s315_s9 }
   0x8   :  { %s434_s10 = scalar_lea.vmem %s316_s9, 256  ;;  %p439_p1 = scmp.lt.s32.totalorder %s316_s9, %s316_s9 }
   0x9   :  { %392 = vmatpush3.bf16.msra.mxu0 %v389_v5  ;;  %p435_p0 = scmp.ne.s32.totalorder %s316_s9, %s434_s10  ;;  %p440_p2 = scmp.lt.s32.totalorder %s434_s10, %s434_s10 }
   0xa   :  { %394 = vmatprep.subr.bf16.mxu0 %v393_v9 }
   0xb   :  { %p441_p3 = por %p440_p2, %p439_p1 }
   0xd   :  { %396 = vmatpush3.bf16.msra.mxu0 %v393_v9  ;;  %p442_p4 = pnand %p441_p3, %p435_p0 }
   0xe   :  { %398 = vmatprep.subr.bf16.mxu0 %v397_v12 }
  0x11   :  { %400 = vmatpush3.bf16.msra.mxu0 %v397_v12 }
  0x14   :  { %369 = vmatmul.mubr.msk.f32.vlgmr.msra.gmra.mrb[0].mxu0 %vm25_vm0, %v16_v13 }
  0xe7   :  { %v370_v14 = vpop.f32.mrb[0].mxu0 }
  0xe8   :  { %v98_v15 = vpop.f32.mrb[1].mxu0 }
  0xe9   :  { %v421_v16 = vpack.i.bf16 %v370_v14, %v98_v15  ;;  %375 = vmatprep.mubr.msk.f32.mxu1 %vm115_vm1, %v98_v15 }
  0xeb   :  { %417 = vrot.lane.b32.xlu0 %v421_v16, %s458_s5 }
 0x15d   :  { %v418_v17 = vpop.permute.xlu0 %417 }
 0x15e   :  { %v420_v18 = vunpack.i.h.bf16 %v418_v17  ;;  %v419_v19 = vunpack.i.l.bf16 %v418_v17 }
 0x160   :  { %v401_v20 = vpack.c.bf16 %v420_v18, %v419_v19 }
 0x162   :  { %403 = vmatprep.subr.msk.bf16.mxu1 %vm402_vm2, %v401_v20 }
 0x163   :  { %406 = vmatpush3.bf16.xpose.msk.msra.mxu1 %vm402_vm2, %v401_v20 }
 0x16a   :  { %376 = vmatmul.mubr.msk.f32.vlgmr.msra.gmra.mrb[0].mxu1 %vm115_vm1, %v370_v14 }
 0x23d   :  { %v377_v23 = vpop.f32.mrb[0].mxu1 }
 0x23e   :  { %v196_v24 = vadd.f32 %v377_v23, %v108_v21  ;;  %v190_v25 = vpop.f32.mrb[1].mxu1 }
 0x23f   :  { %v191_v26 = vadd.f32 %v190_v25, %v107_v22 }
 0x240   :  { %v202_v27 = vsel %vm115_vm1, %v196_v24, -inf }
 0x241   :  { %203 = vmax.xlane.f32.xlu1 %v202_v27  ;;  %v199_v28 = vsel %vm115_vm1, %v191_v26, -inf }
 0x242   :  { %200 = vmax.xlane.f32.xlu0 %v199_v28 }
 0x2ce   :  { %v204_v29 = vpop.xlane.xlu1 %203 }
 0x2cf   :  { %v206_v30 = vsub.f32 %v196_v24, %v204_v29  ;;  %v201_v31 = vpop.xlane.xlu0 %200 }
 0x2d0   :  { %v205_v32 = vsub.f32 %v191_v26, %v201_v31 }
 0x2d1   :  { %v209_v33 = vmul.f32 1.442695, %v206_v30 }
 0x2d2   :  { %v207_v34 = vmul.f32 1.442695, %v205_v32 }
 0x2d3   :  { %426 = vpow2.f32 %v209_v33 }
 0x2d4   :  { %428 = vpow2.f32 %v207_v34 }
 0x2dd   :  { %v427_v35 = vpop.eup %426 }
 0x2de   :  { %v214_v36 = vsel %vm115_vm1, %v427_v35, 0.0  ;;  %v429_v37 = vpop.eup %428 }
 0x2df   :  { %215 = vadd.xlane.f32.xlu1 %v214_v36  ;;  %v211_v38 = vsel %vm115_vm1, %v429_v37, 0.0 }
 0x2e3   :  { %212 = vadd.xlane.f32.xlu1 %v211_v38 }
 0x2f4   :  { %422 = vrot.lane.b32.xlu1 %v421_v16, %s459_s2 }
 0x36c   :  { %v216_v39 = vpop.xlane.xlu1 %215 }
 0x36d   :  { %430 = vrcp.f32 %v216_v39 }
 0x370   :  { %v213_v40 = vpop.xlane.xlu1 %212 }
 0x371   :  { %432 = vrcp.f32 %v213_v40 }
 0x374   :  { %v423_v41 = vpop.permute.xlu1 %422 }
 0x375   :  { %v425_v42 = vunpack.i.h.bf16 %v423_v41  ;;  %v424_v43 = vunpack.i.l.bf16 %v423_v41 }
 0x377   :  { %v407_v44 = vpack.c.bf16 %v425_v42, %v424_v43  ;;  %v431_v45 = vpop.eup %430 }
 0x378   :  { %v220_v48 = vmul.f32 %v431_v45, %v427_v35 }
 0x379   :  { %408 = vmatprep.subr.bf16.mxu1 %v407_v44 }
 0x37a   :  { %410 = vmatpush3.bf16.msra.mxu1 %v407_v44 }
 0x37b   :  { %v433_v46 = vpop.eup %432 }
 0x37c   :  { %v219_v47 = vmul.f32 %v433_v46, %v429_v37 }
 0x37e   :  { %382 = vmatprep.mubr.msk.f32.mxu1 %vm115_vm1, %v219_v47 }
 0x37f   :  { %383 = vmatmul.mubr.msk.f32.vlgmr.msra.gmra.mrb[2].mxu1 %vm115_vm1, %v220_v48 }
 0x452   :  { %v384_v49 = vpop.f32.mrb[2].mxu1 }
 0x453   :  { %309 = vst.msk [vmem:[#allocation2 + $0x8] sm:$0xff] %vm115_vm1, %v384_v49  ;;  %v299_v50 = vpop.f32.mrb[3].mxu1 }
 0x454   :  { %308 = vst.msk [vmem:[#allocation2] sm:$0xff] %vm115_vm1, %v299_v50 }
 0x455   :  { %445 = shalt.err (!%p442_p4)
}
 0x456   :  { %s446_s13 = scalar_lea.hbm %s548_s3, 256 }
 0x457   :  { %p447_p5 = scmp.ne.s32.totalorder %s548_s3, %s446_s13  ;;  %p450_p6 = scmp.lt.u32.totalorder %s446_s13, %s548_s3 }
 0x459   :  { %p452_p7 = pnand %p450_p6, %p447_p5 }
 0x45b   :  { %455 = shalt.err (!%p452_p7)
}
 0x45c   :  { %s461_s18 = smov 128   ;;  %s462_s19 = smov 8  }
 0x45d   :  { %321 = dma.vmem_to_hbm [thread:$0]  %s316_s9, 256, %s548_s3, [#allocation3], %s461_s18, %s461_s18, %s462_s19  }
 0x45e   :  { %456 = dma.done.wait [#allocation3], 256  }
 0x45f   :  { %457 = vsyncadd [#allocation3], 4294967040 }
 0x460   :  { %325 = vsyncpa [#allocation3], 1 }

</bundles_post_ra>
